<compile_context>
chip_gen: v7x
topology: tpu7x:2x2x1
jax: 0.10.0
libtpu: 0.0.40
codegen_flags: <defaults>
</compile_context>

<pallas_src>
import functools
import math

import jax
import jax.numpy as jnp
from jax import lax
from jax.experimental import pallas as pl
from jax.experimental.pallas import tpu as pltpu


def _cdiv(a, b):
    return -(-a // b)


def _round_up(x, m):
    return ((x + m - 1) // m) * m


# ----------------------------- VMEM budgets --------------------------------

_BUDGET_CACHE = None


def _budgets():
    """(scoped vmem_limit_bytes, io budget) derived from the actual part."""
    global _BUDGET_CACHE
    if _BUDGET_CACHE is None:
        cap = 64 * 1024 * 1024                       # conservative default (v7x)
        try:
            info = pltpu.get_tpu_info()
            cap = int(getattr(info, "vmem_capacity_bytes", cap) or cap)
        except Exception:
            pass
        # ~36 MiB scoped on 64-MiB parts (v7x), ~72 MiB on 128-MiB parts.
        vmem_limit = min((cap * 9) // 16, 96 * 1024 * 1024)
        # io budget covers double-buffered in/out tiles + ~16 B/elem fp32 temps;
        # the remaining half of the scoped limit is headroom for extra temps
        # and compiler-internal scratch.
        io_budget = vmem_limit // 2
        _BUDGET_CACHE = (int(vmem_limit), int(io_budget))
    return _BUDGET_CACHE


# ---------------------------- tile selection --------------------------------


def _even_steps(total, tile, align):
    # Best-effort: keep cdiv(total, tile) even when > 1 so v7x's two
    # TensorCores split the "parallel" axis evenly; one extra step is noise
    # on single-TC v5e/v6e.
    tile = max(align, (tile // align) * align)
    steps = _cdiv(total, tile)
    if steps > 1 and steps % 2 == 1:
        tile = max(align, _round_up(_cdiv(total, steps + 1), align))
    return tile


def _pick_rows(rows, lane_width, itemsize, io_budget):
    # per-row bytes: double-buffered input + output (4 * itemsize) + fp32 temps.
    bytes_per_row = lane_width * (4 * itemsize + 16)
    t = io_budget // max(1, bytes_per_row)
    t = max(8, min(t, 2048))
    t = min(t, _round_up(rows, 8))
    return _even_steps(rows, t, 8)


def _pick_cf_blocks(n, c, hw, itemsize, io_budget):
    bytes_per_elem = 4 * itemsize + 16
    per_image = c * hw * bytes_per_elem
    if per_image <= io_budget:
        # Small spatial extent: block whole images -> one contiguous DMA each.
        bn = max(1, min(n, io_budget // max(1, per_image)))
        return _even_steps(n, bn, 1), hw
    # Large spatial extent: one image per step, tile the (lane) HW axis.
    thw = io_budget // max(1, c * bytes_per_elem)
    thw = max(128, min((thw // 128) * 128, 16384))
    thw = min(thw, _round_up(hw, 128))
    return 1, _even_steps(hw, thw, 128)


# ------------------------------- kernels ------------------------------------


def _ln_last_kernel(x_ref, w_ref, b_ref, o_ref, *, eps):
    # x_ref: (tile_rows, C); w_ref/b_ref: (1, C).  Two-pass stats over C.
    x = x_ref[...].astype(jnp.float32)
    mean = jnp.mean(x, axis=-1, keepdims=True)
    xc = x - mean
    var = jnp.mean(xc * xc, axis=-1, keepdims=True)
    inv = lax.rsqrt(var + eps)
    o_ref[...] = (xc * inv * w_ref[...].astype(jnp.float32)
                  + b_ref[...].astype(jnp.float32)).astype(o_ref.dtype)


def _exact_dot(a, onehot):
    # Segmented sum / broadcast via the (otherwise idle) MXU.  hi/lo split
    # keeps the result accurate to ~f32 even if the matmul path internally
    # evaluates at bf16; `onehot` entries (0/1) are exact in bf16.
    a_hi = a.astype(jnp.bfloat16).astype(jnp.float32)
    a_lo = a - a_hi
    return (jnp.dot(a_hi, onehot, preferred_element_type=jnp.float32)
            + jnp.dot(a_lo, onehot, preferred_element_type=jnp.float32))


def _ln_last_packed_kernel(x_ref, w_ref, b_ref, o_ref, *, eps, c, k):
    # x_ref: (tile_rows, k*c) — k original rows packed per physical row so the
    # lane axis is a multiple of 128 (dense stores).  w_ref/b_ref: (1, k*c),
    # weight/bias tiled k times.  Per-segment stats via one-hot matmuls; no
    # in-kernel reshapes that would cross (8,128) tile boundaries.
    width = c * k
    seg = 128  # segment axis padded to a full lane width (MXU-friendly shapes)
    x = x_ref[...].astype(jnp.float32)

    r = lax.broadcasted_iota(jnp.int32, (width, seg), 0)
    s = lax.broadcasted_iota(jnp.int32, (width, seg), 1)
    gather = ((r >= s * c) & (r < (s + 1) * c)).astype(jnp.float32)     # (k*c, 128)
    s2 = lax.broadcasted_iota(jnp.int32, (seg, width), 0)
    r2 = lax.broadcasted_iota(jnp.int32, (seg, width), 1)
    scatter = ((r2 >= s2 * c) & (r2 < (s2 + 1) * c)).astype(jnp.float32)  # (128, k*c)

    inv_c = jnp.float32(1.0 / c)
    seg_mean = _exact_dot(x, gather) * inv_c          # (rows, 128); lanes >= k are 0
    mean = _exact_dot(seg_mean, scatter)              # (rows, k*c)
    xc = x - mean
    seg_var = _exact_dot(xc * xc, gather) * inv_c     # (rows, 128)
    seg_inv = lax.rsqrt(seg_var + eps)                # junk lanes -> finite rsqrt(eps)
    inv = _exact_dot(seg_inv, scatter)                # junk lanes killed by zero scatter rows
    o_ref[...] = (xc * inv * w_ref[...].astype(jnp.float32)
                  + b_ref[...].astype(jnp.float32)).astype(o_ref.dtype)


def _ln_first_kernel(x_ref, w_ref, b_ref, o_ref, *, eps):
    # x_ref: (bn, C, thw); w_ref/b_ref: (1, C, 1).  Reduce over the channel
    # (sublane) axis — no wrapper transpose needed for NCHW input.
    x = x_ref[...].astype(jnp.float32)
    mean = jnp.mean(x, axis=1, keepdims=True)
    xc = x - mean
    var = jnp.mean(xc * xc, axis=1, keepdims=True)
    inv = lax.rsqrt(var + eps)
    o_ref[...] = (xc * inv * w_ref[...].astype(jnp.float32)
                  + b_ref[...].astype(jnp.float32)).astype(o_ref.dtype)


# ------------------------------- wrappers ------------------------------------


@functools.partial(jax.jit, static_argnames=("eps",))
def _layernorm_channels_last(x, weight, bias, *, eps):
    c = x.shape[-1]
    lead = x.shape[:-1]
    x2d = x.reshape(-1, c)
    rows = x2d.shape[0]
    vmem_limit, io_budget = _budgets()

    # Lane packing: fold k rows into one physical row of width k*c so the
    # output lane axis is a multiple of 128 (dense vst instead of vst.msk).
    k = 1
    if c % 128 != 0:
        k0 = 128 // math.gcd(c, 128)
        if rows % k0 == 0 and k0 * c <= 2048:
            k = k0

    if k > 1:
        rp, width = rows // k, k * c
        xp = x2d.reshape(rp, width)                       # free row-major reshape
        wp = jnp.tile(weight.reshape(1, c), (1, k))
        bp = jnp.tile(bias.reshape(1, c), (1, k))
        kern = functools.partial(_ln_last_packed_kernel, eps=eps, c=c, k=k)
    else:
        rp, width = rows, c
        xp, wp, bp = x2d, weight.reshape(1, c), bias.reshape(1, c)
        kern = functools.partial(_ln_last_kernel, eps=eps)

    tr = _pick_rows(rp, width, x.dtype.itemsize, io_budget)

    out = pl.pallas_call(
        kern,
        out_shape=jax.ShapeDtypeStruct((rp, width), x.dtype),
        grid_spec=pltpu.PrefetchScalarGridSpec(
            num_scalar_prefetch=0,
            grid=(_cdiv(rp, tr),),        # only the (non-reduced) row axis is ragged
            in_specs=[
                pl.BlockSpec((tr, width), lambda i: (i, 0)),
                pl.BlockSpec((1, width), lambda i: (0, 0)),
                pl.BlockSpec((1, width), lambda i: (0, 0)),
            ],
            out_specs=pl.BlockSpec((tr, width), lambda i: (i, 0)),
        ),
        compiler_params=pltpu.CompilerParams(
            dimension_semantics=("parallel",),
            vmem_limit_bytes=vmem_limit),
    )(xp, wp, bp)
    return out.reshape(rows, c).reshape(*lead, c)


@functools.partial(jax.jit, static_argnames=("eps",))
def _layernorm_channels_first(x, weight, bias, *, eps):
    n, c, h, w = x.shape
    hw = h * w
    x3d = x.reshape(n, c, hw)
    vmem_limit, io_budget = _budgets()
    bn, thw = _pick_cf_blocks(n, c, hw, x.dtype.itemsize, io_budget)
    w3d = weight.reshape(1, c, 1)
    b3d = bias.reshape(1, c, 1)

    out = pl.pallas_call(
        functools.partial(_ln_first_kernel, eps=eps),
        out_shape=jax.ShapeDtypeStruct((n, c, hw), x.dtype),
        grid_spec=pltpu.PrefetchScalarGridSpec(
            num_scalar_prefetch=0,
            grid=(_cdiv(n, bn), _cdiv(hw, thw)),
            in_specs=[
                pl.BlockSpec((bn, c, thw), lambda i, j: (i, 0, j)),
                pl.BlockSpec((1, c, 1), lambda i, j: (0, 0, 0)),
                pl.BlockSpec((1, c, 1), lambda i, j: (0, 0, 0)),
            ],
            out_specs=pl.BlockSpec((bn, c, thw), lambda i, j: (i, 0, j)),
        ),
        compiler_params=pltpu.CompilerParams(
            dimension_semantics=("parallel", "parallel"),
            vmem_limit_bytes=vmem_limit),
    )(x3d, w3d, b3d)
    return out.reshape(n, c, h, w)


class LayerNorm:
    """JAX/Pallas port of the DINO ConvNeXt LayerNorm."""

    def __init__(self, normalized_shape, eps=1e-6, data_format="channels_last"):
        if data_format not in ("channels_last", "channels_first"):
            raise NotImplementedError
        self.normalized_shape = int(normalized_shape)
        self.eps = float(eps)
        self.data_format = data_format
        # nn.Parameter(torch.ones/zeros(normalized_shape))
        self.weight = jnp.ones((self.normalized_shape,), jnp.float32)
        self.bias = jnp.zeros((self.normalized_shape,), jnp.float32)

    def __call__(self, x):
        if self.data_format == "channels_last":
            assert x.shape[-1] == self.normalized_shape
            return _layernorm_channels_last(x, self.weight, self.bias, eps=self.eps)
        else:
            assert x.shape[1] == self.normalized_shape
            return _layernorm_channels_first(x, self.weight, self.bias, eps=self.eps)


# ------------------------------ references ----------------------------------


def _ref_channels_first(x, w, b, eps):
    u = x.mean(axis=1, keepdims=True)
    s = ((x - u) ** 2).mean(axis=1, keepdims=True)
    xn = (x - u) / jnp.sqrt(s + eps)
    return w[None, :, None, None] * xn + b[None, :, None, None]


def _ref_channels_last(x, w, b, eps):
    u = x.mean(axis=-1, keepdims=True)
    s = ((x - u) ** 2).mean(axis=-1, keepdims=True)
    return (x - u) / jnp.sqrt(s + eps) * w + b


if __name__ == "__main__":
    key = jax.random.PRNGKey(0)
    k1, k2, k3, k4 = jax.random.split(key, 4)

    # channels_first path (NCHW conv-style input) — (bn, C, HW) blocking
    x_cf = jax.random.normal(k1, (2, 4, 16, 16), jnp.float32)
    ln_cf = LayerNorm(4, eps=1e-6, data_format="channels_first")
    ln_cf.weight = 1.0 + 0.1 * jnp.arange(4, dtype=jnp.float32)
    ln_cf.bias = 0.05 * jnp.arange(4, dtype=jnp.float32)
    y_cf = jax.block_until_ready(ln_cf(x_cf))
    ref_cf = _ref_channels_first(x_cf, ln_cf.weight, ln_cf.bias, 1e-6)
    assert jnp.allclose(y_cf, ref_cf, atol=1e-4, rtol=1e-4)

    # channels_first with HW not a multiple of 128 (full-HW block, dense DMA)
    x_cf2 = jax.random.normal(k2, (2, 4, 10, 10), jnp.float32)
    y_cf2 = jax.block_until_ready(ln_cf(x_cf2))
    ref_cf2 = _ref_channels_first(x_cf2, ln_cf.weight, ln_cf.bias, 1e-6)
    assert jnp.allclose(y_cf2, ref_cf2, atol=1e-4, rtol=1e-4)

    # channels_last path (NHWC-style input) — exercises the lane-packed kernel
    # (C=32, k=4 -> 128-lane dense stores, per-segment stats via MXU one-hots)
    x_cl = jax.random.normal(k3, (2, 8, 8, 32), jnp.float32)
    ln_cl = LayerNorm(32, eps=1e-6, data_format="channels_last")
    ln_cl.weight = 1.0 + 0.01 * jnp.arange(32, dtype=jnp.float32)
    ln_cl.bias = 0.02 * jnp.arange(32, dtype=jnp.float32)
    y_cl = jax.block_until_ready(ln_cl(x_cl))
    ref_cl = _ref_channels_last(x_cl, ln_cl.weight, ln_cl.bias, 1e-6)
    assert jnp.allclose(y_cl, ref_cl, atol=1e-4, rtol=1e-4)

    # channels_last with a ragged row count (R % 4 != 0 -> unpacked fallback,
    # masked last block on the row axis only)
    x_cl2 = jax.random.normal(k4, (2, 7, 9, 32), jnp.float32)
    y_cl2 = jax.block_until_ready(ln_cl(x_cl2))
    ref_cl2 = _ref_channels_last(x_cl2, ln_cl.weight, ln_cl.bias, 1e-6)
    assert jnp.allclose(y_cl2, ref_cl2, atol=1e-4, rtol=1e-4)

    print("KERNEL_OK")
</pallas_src>

<mosaic_0001>
module attributes {stable_mosaic.version = 11 : i64} {
  func.func @_ln_first_kernel(%arg0: i32, %arg1: i32, %arg2: memref<2x4x256xf32, #tpu.memory_space<vmem>>, %arg3: memref<1x4x1xf32, #tpu.memory_space<vmem>>, %arg4: memref<1x4x1xf32, #tpu.memory_space<vmem>>, %arg5: memref<2x4x256xf32, #tpu.memory_space<vmem>>) attributes {dimension_semantics = [#tpu.dimension_semantics<parallel>, #tpu.dimension_semantics<parallel>], iteration_bounds = array<i64: 1, 1>, scalar_prefetch = 0 : i64, scratch_operands = 0 : i64, tpu.core_type = #tpu.core_type<tc>, window_params = [{transform_indices = @transform_0, window_bounds = array<i64: 2, 4, 256>}, {pipeline_mode = #tpu.pipeline_mode<synchronous>, transform_indices = @transform_1, window_bounds = array<i64: 1, 4, 1>}, {pipeline_mode = #tpu.pipeline_mode<synchronous>, transform_indices = @transform_2, window_bounds = array<i64: 1, 4, 1>}, {transform_indices = @transform_3, window_bounds = array<i64: 2, 4, 256>}]} {
    %c0 = arith.constant 0 : index
    %c0_0 = arith.constant 0 : index
    %c0_1 = arith.constant 0 : index
    %0 = vector.load %arg2[%c0, %c0_0, %c0_1] : memref<2x4x256xf32, #tpu.memory_space<vmem>>, vector<2x4x256xf32>
    %cst = arith.constant dense<0.000000e+00> : vector<2x256xf32>
    %1 = vector.multi_reduction <add>, %0, %cst [1] : vector<2x4x256xf32> to vector<2x256xf32>
    %2 = vector.shape_cast %1 : vector<2x256xf32> to vector<2x1x256xf32>
    %cst_2 = arith.constant 4.000000e+00 : f32
    %3 = vector.broadcast %cst_2 : f32 to vector<2x1x256xf32>
    %4 = arith.divf %2, %3 : vector<2x1x256xf32>
    %5 = vector.broadcast %4 : vector<2x1x256xf32> to vector<2x4x256xf32>
    %6 = arith.subf %0, %5 : vector<2x4x256xf32>
    %7 = arith.mulf %6, %6 : vector<2x4x256xf32>
    %cst_3 = arith.constant dense<0.000000e+00> : vector<2x256xf32>
    %8 = vector.multi_reduction <add>, %7, %cst_3 [1] : vector<2x4x256xf32> to vector<2x256xf32>
    %9 = vector.shape_cast %8 : vector<2x256xf32> to vector<2x1x256xf32>
    %cst_4 = arith.constant 4.000000e+00 : f32
    %10 = vector.broadcast %cst_4 : f32 to vector<2x1x256xf32>
    %11 = arith.divf %9, %10 : vector<2x1x256xf32>
    %cst_5 = arith.constant 9.99999997E-7 : f32
    %12 = vector.broadcast %cst_5 : f32 to vector<2x1x256xf32>
    %13 = arith.addf %11, %12 : vector<2x1x256xf32>
    %14 = math.rsqrt %13 : vector<2x1x256xf32>
    %15 = vector.broadcast %14 : vector<2x1x256xf32> to vector<2x4x256xf32>
    %16 = arith.mulf %6, %15 : vector<2x4x256xf32>
    %c0_6 = arith.constant 0 : index
    %c0_7 = arith.constant 0 : index
    %c0_8 = arith.constant 0 : index
    %17 = vector.load %arg3[%c0_6, %c0_7, %c0_8] : memref<1x4x1xf32, #tpu.memory_space<vmem>>, vector<1x4x1xf32>
    %18 = vector.broadcast %17 : vector<1x4x1xf32> to vector<2x4x256xf32>
    %19 = arith.mulf %16, %18 : vector<2x4x256xf32>
    %c0_9 = arith.constant 0 : index
    %c0_10 = arith.constant 0 : index
    %c0_11 = arith.constant 0 : index
    %20 = vector.load %arg4[%c0_9, %c0_10, %c0_11] : memref<1x4x1xf32, #tpu.memory_space<vmem>>, vector<1x4x1xf32>
    %21 = vector.broadcast %20 : vector<1x4x1xf32> to vector<2x4x256xf32>
    %22 = arith.addf %19, %21 : vector<2x4x256xf32>
    %c0_12 = arith.constant 0 : index
    %c0_13 = arith.constant 0 : index
    %c0_14 = arith.constant 0 : index
    %23 = vector.load %arg5[%c0_12, %c0_13, %c0_14] : memref<2x4x256xf32, #tpu.memory_space<vmem>>, vector<2x4x256xf32>
    tpu.vector_store %arg5[%c0_12, %c0_13, %c0_14], %22 {strides = array<i32>} : memref<2x4x256xf32, #tpu.memory_space<vmem>>, vector<2x4x256xf32>,
    return
  }
  func.func @transform_0(%arg0: i32, %arg1: i32) -> (i32, i32, i32) {
    %c0_i32 = arith.constant 0 : i32
    %c0_i32_0 = arith.constant 0 : i32
    return %arg0, %c0_i32, %arg1 : i32, i32, i32
  }
  func.func @transform_1(%arg0: i32, %arg1: i32) -> (i32, i32, i32) {
    %c0_i32 = arith.constant 0 : i32
    %c0_i32_0 = arith.constant 0 : i32
    %c0_i32_1 = arith.constant 0 : i32
    %c0_i32_2 = arith.constant 0 : i32
    return %c0_i32, %c0_i32_0, %c0_i32_1 : i32, i32, i32
  }
  func.func @transform_2(%arg0: i32, %arg1: i32) -> (i32, i32, i32) {
    %c0_i32 = arith.constant 0 : i32
    %c0_i32_0 = arith.constant 0 : i32
    %c0_i32_1 = arith.constant 0 : i32
    %c0_i32_2 = arith.constant 0 : i32
    return %c0_i32, %c0_i32_0, %c0_i32_1 : i32, i32, i32
  }
  func.func @transform_3(%arg0: i32, %arg1: i32) -> (i32, i32, i32) {
    %c0_i32 = arith.constant 0 : i32
    %c0_i32_0 = arith.constant 0 : i32
    return %arg0, %c0_i32, %arg1 : i32, i32, i32
  }
}

</mosaic_0001>

<bundles_post_ra>
// kernel: _layernorm_channels_first.1
= control target key start
LH: loop header
LB: loop body
LE: loop exit
PB: predicated region body
PF: predicated region fallthrough
CT: control target
= control target key end

     0   :  { %v173_v0 = vmov 0   ;;  %vm22_vm0 = vcmask 1043456   ;;  %s221_s1 = inlined_call_operand.vmem [shape: f32[1,4,1], index: 1, kind: input, shape index: {}]   ;;  %s222_s2 = inlined_call_operand.vmem [shape: f32[1,4,1], index: 2, kind: input, shape index: {}]   ;;  %s223_s0 = inlined_call_operand.vmem [shape: f32[2,4,256], index: 0, kind: input, shape index: {}]   ;;  %s224_s3 = inlined_call_operand.vmem [shape: f32[2,4,256], index: 3, kind: output, shape index: {}]  }
   0x1   :  { %162 = vset.pattern.permute.xlu0 %v173_v0  ;;  %v124_v1 = vld [vmem:[%s221_s1] sm:$0xf]  ;;  %v15_v4 = vld [vmem:[%s223_s0 + $0x8] sm:$0xff] }
   0x2   :  { %127 = vperm.xlu0 %162, %v124_v1   ;;  %v139_v2 = vld [vmem:[%s222_s2] sm:$0xf]  ;;  %v19_v6 = vcombine.high %v15_v4, %v15_v4  ;;  %v37_v9 = vsel %vm22_vm0, %v15_v4, 0.0 }
   0x3   :  { %v14_v3 = vld [vmem:[%s223_s0] sm:$0xff]  ;;  %v38_v13 = vrot.slane %v37_v9, 4 }
   0x4   :  { %v18_v5 = vcombine.high %v14_v3, %v14_v3  ;;  %v23_v7 = vsel %vm22_vm0, %v14_v3, 0.0  ;;  %v44_v10 = vsel %vm22_vm0, %v19_v6, 0.0 }
   0x5   :  { %v24_v11 = vrot.slane %v23_v7, 4  ;;  %v45_v14 = vrot.slane %v44_v10, 4  ;;  %v39_v17 = vadd.f32 %v38_v13, %v37_v9 }
   0x6   :  { %142 = vperm.xlu0 %162, %v139_v2   ;;  %v30_v8 = vsel %vm22_vm0, %v18_v5, 0.0 }
   0x7   :  { %v31_v12 = vrot.slane %v30_v8, 4  ;;  %v25_v15 = vadd.f32 %v24_v11, %v23_v7  ;;  %v46_v18 = vadd.f32 %v45_v14, %v44_v10  ;;  %v40_v21 = vrot.slane %v39_v17, 2 }
   0x9   :  { %v32_v16 = vadd.f32 %v31_v12, %v30_v8  ;;  %v26_v19 = vrot.slane %v25_v15, 2  ;;  %v47_v22 = vrot.slane %v46_v18, 2  ;;  %v41_v25 = vadd.f32 %v40_v21, %v39_v17 }
   0xa   :  { %v132_v21 = vlaneseq }
   0xb   :  { %v33_v20 = vrot.slane %v32_v16, 2  ;;  %v27_v23 = vadd.f32 %v26_v19, %v25_v15  ;;  %v48_v26 = vadd.f32 %v47_v22, %v46_v18  ;;  %v42_v29 = vrot.slane %v41_v25, 1 }
   0xc   :  { %v174_v19 = vmov 839922192  }
   0xd   :  { %v34_v24 = vadd.f32 %v33_v20, %v32_v16  ;;  %v28_v27 = vrot.slane %v27_v23, 1  ;;  %v49_v30 = vrot.slane %v48_v26, 1  ;;  %v43_v33 = vadd.f32 %v42_v29, %v41_v25 }
   0xe   :  { %v130_v20 = vunpack.c.l.s4 %v174_v19 }
   0xf   :  { %v35_v28 = vrot.slane %v34_v24, 1  ;;  %v29_v31 = vadd.f32 %v28_v27, %v27_v23  ;;  %v50_v34 = vadd.f32 %v49_v30, %v48_v26  ;;  %v54_v37 = vmul.f32 0.25, %v43_v33 }
  0x10   :  { %v131_v25 = vunpack.c.0.s8 %v130_v20  ;;  %v133_v26 = vshrl.u32 %v132_v21, 7 }
  0x11   :  { %v36_v32 = vadd.f32 %v35_v28, %v34_v24  ;;  %v52_v35 = vmul.f32 0.25, %v29_v31  ;;  %v55_v38 = vmul.f32 0.25, %v50_v34 }
  0x12   :  { %v134_v28 = vsub.s32 %v131_v25, %v133_v26 }
  0x13   :  { %v53_v36 = vmul.f32 0.25, %v36_v32  ;;  %v61_v40 = vcombine.low %v54_v37, %v55_v38 }
  0x15   :  { %v60_v39 = vcombine.low %v52_v35, %v53_v36  ;;  %v65_v42 = vsub.f32 %v15_v4, %v61_v40 }
  0x17   :  { %v64_v41 = vsub.f32 %v14_v3, %v60_v39  ;;  %v67_v44 = vmul.f32 %v65_v42, %v65_v42 }
  0x19   :  { %v66_v43 = vmul.f32 %v64_v41, %v64_v41  ;;  %v71_v46 = vcombine.high %v67_v44, %v67_v44  ;;  %v88_v48 = vsel %vm22_vm0, %v67_v44, 0.0 }
  0x1a   :  { %v89_v52 = vrot.slane %v88_v48, 4 }
  0x1b   :  { %v70_v45 = vcombine.high %v66_v43, %v66_v43  ;;  %v74_v47 = vsel %vm22_vm0, %v66_v43, 0.0  ;;  %v95_v51 = vsel %vm22_vm0, %v71_v46, 0.0 }
  0x1c   :  { %v75_v50 = vrot.slane %v74_v47, 4  ;;  %v96_v54 = vrot.slane %v95_v51, 4  ;;  %v90_v56 = vadd.f32 %v89_v52, %v88_v48 }
  0x1d   :  { %v81_v49 = vsel %vm22_vm0, %v70_v45, 0.0 }
  0x1e   :  { %v82_v53 = vrot.slane %v81_v49, 4  ;;  %v76_v55 = vadd.f32 %v75_v50, %v74_v47  ;;  %v97_v58 = vadd.f32 %v96_v54, %v95_v51  ;;  %v91_v60 = vrot.slane %v90_v56, 2 }
  0x20   :  { %v83_v57 = vadd.f32 %v82_v53, %v81_v49  ;;  %v77_v59 = vrot.slane %v76_v55, 2  ;;  %v98_v62 = vrot.slane %v97_v58, 2  ;;  %v92_v0 = vadd.f32 %v91_v60, %v90_v56 }
  0x22   :  { %v84_v61 = vrot.slane %v83_v57, 2  ;;  %v78_v63 = vadd.f32 %v77_v59, %v76_v55  ;;  %v99_v2 = vadd.f32 %v98_v62, %v97_v58  ;;  %v93_v4 = vrot.slane %v92_v0, 1 }
  0x24   :  { %v85_v1 = vadd.f32 %v84_v61, %v83_v57  ;;  %v79_v3 = vrot.slane %v78_v63, 1  ;;  %v100_v6 = vrot.slane %v99_v2, 1  ;;  %v94_v8 = vadd.f32 %v93_v4, %v92_v0 }
  0x26   :  { %v86_v5 = vrot.slane %v85_v1, 1  ;;  %v80_v7 = vadd.f32 %v79_v3, %v78_v63  ;;  %v101_v10 = vadd.f32 %v100_v6, %v99_v2  ;;  %v104_v12 = vmul.f32 0.25, %v94_v8 }
  0x28   :  { %v87_v9 = vadd.f32 %v86_v5, %v85_v1  ;;  %v102_v11 = vmul.f32 0.25, %v80_v7  ;;  %v105_v14 = vmul.f32 0.25, %v101_v10  ;;  %v108_v16 = vadd.f32 1e-06, %v104_v12 }
  0x2a   :  { %v103_v13 = vmul.f32 0.25, %v87_v9  ;;  %v106_v15 = vadd.f32 1e-06, %v102_v11  ;;  %v109_v18 = vadd.f32 1e-06, %v105_v14 }
  0x2c   :  { %v107_v17 = vadd.f32 1e-06, %v103_v13  ;;  %165 = vrsqrt.f32 %v106_v15 }
  0x2d   :  { %167 = vrsqrt.f32 %v108_v16 }
  0x2e   :  { %169 = vrsqrt.f32 %v107_v17 }
  0x2f   :  { %171 = vrsqrt.f32 %v109_v18 }
  0x36   :  { %v166_v22 = vpop.eup %165 }
  0x37   :  { %v168_v23 = vpop.eup %167 }
  0x38   :  { %v170_v24 = vpop.eup %169 }
  0x39   :  { %v172_v27 = vpop.eup %171  ;;  %v118_v29 = vcombine.low %v166_v22, %v170_v24 }
  0x3a   :  { %v119_v30 = vcombine.low %v168_v23, %v172_v27 }
  0x3b   :  { %v122_v32 = vmul.f32 %v118_v29, %v64_v41 }
  0x3c   :  { %v123_v33 = vmul.f32 %v119_v30, %v65_v42 }
  0x81   :  { %v128_v31 = vpop.permute.xlu0 %127 }
  0x82   :  { %v135_v34 = vrot.slane %v128_v31, %v134_v28 }
  0x84   :  { %v137_v36 = vmul.f32 %v135_v34, %v122_v32  ;;  %v138_v37 = vmul.f32 %v135_v34, %v123_v33 }
  0x85   :  { %v143_v35 = vpop.permute.xlu0 %142 }
  0x86   :  { %v150_v38 = vrot.slane %v143_v35, %v134_v28 }
  0x88   :  { %v152_v39 = vadd.f32 %v150_v38, %v137_v36  ;;  %v153_v40 = vadd.f32 %v150_v38, %v138_v37 }
  0x8a   :  { %154 = vst [vmem:[%s224_s3] sm:$0xff] %v152_v39  ;;  %155 = vst [vmem:[%s224_s3 + $0x8] sm:$0xff] %v153_v40 }

</bundles_post_ra>
